<compile_context>
chip_gen: v5e
topology: v5e:2x2
jax: 0.10.0
libtpu: 0.0.40
codegen_flags: <defaults>
</compile_context>

<pallas_src>
import jax
import jax.numpy as jnp
from jax.experimental import pallas as pl
from jax.experimental.pallas import tpu as pltpu


def attention_kernel(ws_ref, wd_ref, v_ref, bias_ref, s_ref, d_ref, out_ref):
    """One grid step processes TB batch elements in their native layout.

    ws_ref  : (H, H)      bf16  W[:, :H]           (shared across grid)
    wd_ref  : (H, H)      bf16  W[:, H:2H]         (shared across grid)
    v_ref   : (H, 1)      f32   attention vector v (shared across grid)
    bias_ref: (TB, H, 1)  f32   hoisted rnn term  (W[:, 2H:] @ rnn^T)^T
    s_ref   : (TB, H, L)  f32   static_hidden tile  (original layout, no relayout)
    d_ref   : (TB, H, L)  f32   dynamic_hidden tile
    out_ref : (TB, 1, L)  f32   softmax(v @ tanh(W @ hidden), axis=L)
    """
    TB = s_ref.shape[0]

    @pl.loop(0, TB)
    def _(j):
        s = s_ref[j].astype(jnp.bfloat16)                    # (H, L)
        d = d_ref[j].astype(jnp.bfloat16)                    # (H, L)

        # W @ cat([static, dynamic, rnn.expand], 1) ==
        #   W_s @ static + W_d @ dynamic + (W_r @ rnn)  (rnn term constant over L)
        pre = jnp.dot(ws_ref[...], s, preferred_element_type=jnp.float32)
        pre = pre + jnp.dot(wd_ref[...], d, preferred_element_type=jnp.float32)
        pre = pre + bias_ref[j]                              # (H,L) + (H,1) lane-broadcast

        t = jnp.tanh(pre)                                    # (H, L) f32 (EUP)

        # scores = v . tanh(...) over H: VPU multiply + sublane reduce.
        scores = jnp.sum(v_ref[...] * t, axis=0, keepdims=True)   # (1, L)

        # Plain row softmax over L (no segment masks, exact normalization).
        m = jnp.max(scores, axis=-1, keepdims=True)
        e = jnp.exp(scores - m)
        denom = jnp.sum(e, axis=-1, keepdims=True)
        out_ref[j] = (e / denom).astype(out_ref.dtype)       # (1, L)


def _step_vmem_bytes(tb, H, L):
    """Honest per-grid-step VMEM footprint (double-buffered blocks + temps)."""
    act = 2 * 2 * (tb * H * L * 4)        # static + dynamic f32 blocks, double-buffered
    bias = 2 * (tb * H * 1 * 4)           # bias block, double-buffered
    out = 2 * (tb * 1 * L * 4)            # output block, double-buffered
    w = 2 * 2 * (H * H * 2)               # two bf16 weight blocks, double-buffered
    vv = 2 * (H * 1 * 4)                  # v
    tmp = 6 * (H * L * 4)                 # pre / tanh / products + headroom
    return act + bias + out + w + vv + tmp


def _choose_batch_tile(B, H, L, budget_bytes=16 << 20):
    """Largest divisor of B whose per-step footprint fits the budget, while
    keeping >= 2 grid steps when possible (v7x megacore sharding)."""
    divisors = [d for d in range(1, B + 1) if B % d == 0]
    fitting = [d for d in divisors if _step_vmem_bytes(d, H, L) <= budget_bytes] or [1]
    tb = max(fitting)
    if tb == B and B > 1:
        tb = max([d for d in fitting if d <= B // 2] or [min(fitting)])
    return tb


def attention(W, v, static_hidden, dynamic_hidden, rnn_out):
    """Forward pass of drl4vrp `Attention`.

    W: (1, H, 3H) or (H, 3H); v: (1, 1, H) / (1, H) / (H,);
    static_hidden, dynamic_hidden: (B, H, L); rnn_out: (B, H).
    Returns attns: (B, 1, L) = softmax(v @ tanh(W @ cat([s, d, rnn.expand], 1)), dim=2).
    """
    B, H, L = static_hidden.shape
    W2 = jnp.reshape(W, (H, 3 * H)).astype(jnp.float32)
    v_col = jnp.reshape(v, (H, 1)).astype(jnp.float32)

    # Split W = [W_s | W_d | W_r]; weights go to the MXU in bf16.
    w_s = W2[:, :H].astype(jnp.bfloat16)                     # (H, H)
    w_d = W2[:, H:2 * H].astype(jnp.bfloat16)                # (H, H)
    # Hoist the rnn term (constant over L): tiny XLA matmul, f32.
    bias = jnp.einsum('hk,bk->bh', W2[:, 2 * H:], rnn_out.astype(jnp.float32))
    bias = bias[:, :, None]                                  # (B, H, 1)

    static_hidden = static_hidden.astype(jnp.float32)        # no-op if already f32
    dynamic_hidden = dynamic_hidden.astype(jnp.float32)

    TB = _choose_batch_tile(B, H, L)
    grid = (B // TB,)
    step_bytes = _step_vmem_bytes(TB, H, L)
    vmem_limit = int(min(max(2 * step_bytes, 32 << 20), 48 << 20))

    return pl.pallas_call(
        attention_kernel,
        out_shape=jax.ShapeDtypeStruct((B, 1, L), jnp.float32),
        grid_spec=pltpu.PrefetchScalarGridSpec(
            num_scalar_prefetch=0,
            grid=grid,
            in_specs=[
                pl.BlockSpec((H, H), lambda i: (0, 0)),          # W_s (shared)
                pl.BlockSpec((H, H), lambda i: (0, 0)),          # W_d (shared)
                pl.BlockSpec((H, 1), lambda i: (0, 0)),          # v   (shared)
                pl.BlockSpec((TB, H, 1), lambda i: (i, 0, 0)),   # hoisted rnn bias
                pl.BlockSpec((TB, H, L), lambda i: (i, 0, 0)),   # static_hidden tile
                pl.BlockSpec((TB, H, L), lambda i: (i, 0, 0)),   # dynamic_hidden tile
            ],
            out_specs=pl.BlockSpec((TB, 1, L), lambda i: (i, 0, 0)),
        ),
        compiler_params=pltpu.CompilerParams(
            dimension_semantics=("parallel",),
            vmem_limit_bytes=vmem_limit),
    )(w_s, w_d, v_col, bias, static_hidden, dynamic_hidden)


def attention_reference(W, v, static_hidden, dynamic_hidden, rnn_out):
    """Pure-JAX f32 reference mirroring the PyTorch code."""
    B, H, L = static_hidden.shape
    W2 = jnp.reshape(W, (H, 3 * H))
    v2 = jnp.reshape(v, (1, H))
    hidden = jnp.concatenate(
        [static_hidden, dynamic_hidden,
         jnp.broadcast_to(rnn_out[:, :, None], (B, H, L))], axis=1)      # (B, 3H, L)
    pre = jnp.einsum('hk,bkl->bhl', W2, hidden)
    attns = jnp.einsum('ih,bhl->bil', v2, jnp.tanh(pre))
    return jax.nn.softmax(attns, axis=2)


if __name__ == "__main__":
    B, H, L = 2, 32, 8
    key = jax.random.PRNGKey(0)
    k_w, k_v, k_s, k_d, k_r = jax.random.split(key, 5)

    # PyTorch-shaped parameters (module declares zeros; use small randn so the
    # softmax is non-trivial while staying fully deterministic).
    W = 0.1 * jax.random.normal(k_w, (1, H, 3 * H), dtype=jnp.float32)
    v = 0.1 * jax.random.normal(k_v, (1, 1, H), dtype=jnp.float32)

    static_hidden = jax.random.normal(k_s, (B, H, L), dtype=jnp.float32)
    dynamic_hidden = jax.random.normal(k_d, (B, H, L), dtype=jnp.float32)
    rnn_out = jax.random.normal(k_r, (B, H), dtype=jnp.float32)

    out = attention(W, v, static_hidden, dynamic_hidden, rnn_out)
    out = jax.block_until_ready(out)

    ref = attention_reference(W, v, static_hidden, dynamic_hidden, rnn_out)
    assert out.shape == (B, 1, L)
    # bf16 matmul inputs vs an all-f32 reference.
    assert jnp.allclose(out, ref, atol=2e-2, rtol=2e-2), "mismatch vs reference"

    print("KERNEL_OK")
</pallas_src>

<mosaic_0001>
module attributes {stable_mosaic.version = 11 : i64} {
  func.func @attention_kernel(%arg0: i32, %arg1: memref<32x32xbf16, #tpu.memory_space<vmem>>, %arg2: memref<32x32xbf16, #tpu.memory_space<vmem>>, %arg3: memref<32x1xf32, #tpu.memory_space<vmem>>, %arg4: memref<1x32x1xf32, #tpu.memory_space<vmem>>, %arg5: memref<1x32x8xf32, #tpu.memory_space<vmem>>, %arg6: memref<1x32x8xf32, #tpu.memory_space<vmem>>, %arg7: memref<1x1x8xf32, #tpu.memory_space<vmem>>) attributes {dimension_semantics = [#tpu.dimension_semantics<parallel>], iteration_bounds = array<i64: 2>, scalar_prefetch = 0 : i64, scratch_operands = 0 : i64, tpu.core_type = #tpu.core_type<tc>, window_params = [{pipeline_mode = #tpu.pipeline_mode<synchronous>, transform_indices = @transform_0, window_bounds = array<i64: 32, 32>}, {pipeline_mode = #tpu.pipeline_mode<synchronous>, transform_indices = @transform_1, window_bounds = array<i64: 32, 32>}, {pipeline_mode = #tpu.pipeline_mode<synchronous>, transform_indices = @transform_2, window_bounds = array<i64: 32, 1>}, {transform_indices = @transform_3, window_bounds = array<i64: 1, 32, 1>}, {transform_indices = @transform_4, window_bounds = array<i64: 1, 32, 8>}, {transform_indices = @transform_5, window_bounds = array<i64: 1, 32, 8>}, {transform_indices = @transform_6, window_bounds = array<i64: 1, 1, 8>}]} {
    %c0_i32 = arith.constant 0 : i32
    %c1_i32 = arith.constant 1 : i32
    %0 = arith.muli %c0_i32, %c1_i32 : i32
    %c0_i32_0 = arith.constant 0 : i32
    %1 = arith.addi %c0_i32_0, %0 : i32
    %2 = arith.index_cast %1 : i32 to index
    %c0 = arith.constant 0 : index
    %c0_1 = arith.constant 0 : index
    %3 = vector.load %arg5[%2, %c0, %c0_1] : memref<1x32x8xf32, #tpu.memory_space<vmem>>, vector<1x32x8xf32>
    %4 = vector.shape_cast %3 : vector<1x32x8xf32> to vector<32x8xf32>
    %5 = arith.truncf %4 : vector<32x8xf32> to vector<32x8xbf16>
    %6 = arith.index_cast %1 : i32 to index
    %c0_2 = arith.constant 0 : index
    %c0_3 = arith.constant 0 : index
    %7 = vector.load %arg6[%6, %c0_2, %c0_3] : memref<1x32x8xf32, #tpu.memory_space<vmem>>, vector<1x32x8xf32>
    %8 = vector.shape_cast %7 : vector<1x32x8xf32> to vector<32x8xf32>
    %9 = arith.truncf %8 : vector<32x8xf32> to vector<32x8xbf16>
    %c0_4 = arith.constant 0 : index
    %c0_5 = arith.constant 0 : index
    %10 = vector.load %arg1[%c0_4, %c0_5] : memref<32x32xbf16, #tpu.memory_space<vmem>>, vector<32x32xbf16>
    %cst = arith.constant dense<0.000000e+00> : vector<32x8xf32>
    %11 = tpu.matmul %10, %5, %cst {dimension_numbers = #tpu.dot_dimension_numbers<[1], [0], [0], [1], [0, 0, 1, 1], [], []>} : vector<32x32xbf16>, vector<32x8xbf16>, vector<32x8xf32> -> vector<32x8xf32>
    %c0_6 = arith.constant 0 : index
    %c0_7 = arith.constant 0 : index
    %12 = vector.load %arg2[%c0_6, %c0_7] : memref<32x32xbf16, #tpu.memory_space<vmem>>, vector<32x32xbf16>
    %cst_8 = arith.constant dense<0.000000e+00> : vector<32x8xf32>
    %13 = tpu.matmul %12, %9, %cst_8 {dimension_numbers = #tpu.dot_dimension_numbers<[1], [0], [0], [1], [0, 0, 1, 1], [], []>} : vector<32x32xbf16>, vector<32x8xbf16>, vector<32x8xf32> -> vector<32x8xf32>
    %14 = arith.addf %11, %13 : vector<32x8xf32>
    %15 = arith.index_cast %1 : i32 to index
    %c0_9 = arith.constant 0 : index
    %c0_10 = arith.constant 0 : index
    %16 = vector.load %arg4[%15, %c0_9, %c0_10] : memref<1x32x1xf32, #tpu.memory_space<vmem>>, vector<1x32x1xf32>
    %17 = vector.shape_cast %16 : vector<1x32x1xf32> to vector<32x1xf32>
    %18 = vector.broadcast %17 : vector<32x1xf32> to vector<32x8xf32>
    %19 = arith.addf %14, %18 : vector<32x8xf32>
    %20 = math.tanh %19 : vector<32x8xf32>
    %c0_11 = arith.constant 0 : index
    %c0_12 = arith.constant 0 : index
    %21 = vector.load %arg3[%c0_11, %c0_12] : memref<32x1xf32, #tpu.memory_space<vmem>>, vector<32x1xf32>
    %22 = vector.broadcast %21 : vector<32x1xf32> to vector<32x8xf32>
    %23 = arith.mulf %22, %20 : vector<32x8xf32>
    %cst_13 = arith.constant dense<0.000000e+00> : vector<8xf32>
    %24 = vector.multi_reduction <add>, %23, %cst_13 [0] : vector<32x8xf32> to vector<8xf32>
    %25 = vector.shape_cast %24 : vector<8xf32> to vector<1x8xf32>
    %cst_14 = arith.constant dense<0xFF800000> : vector<1xf32>
    %26 = vector.multi_reduction <maximumf>, %25, %cst_14 [1] : vector<1x8xf32> to vector<1xf32>
    %27 = vector.shape_cast %26 : vector<1xf32> to vector<1x1xf32>
    %28 = vector.broadcast %27 : vector<1x1xf32> to vector<1x8xf32>
    %29 = arith.subf %25, %28 : vector<1x8xf32>
    %30 = math.exp %29 : vector<1x8xf32>
    %cst_15 = arith.constant dense<0.000000e+00> : vector<1xf32>
    %31 = vector.multi_reduction <add>, %30, %cst_15 [1] : vector<1x8xf32> to vector<1xf32>
    %32 = vector.shape_cast %31 : vector<1xf32> to vector<1x1xf32>
    %33 = vector.broadcast %32 : vector<1x1xf32> to vector<1x8xf32>
    %34 = arith.divf %30, %33 : vector<1x8xf32>
    %35 = arith.index_cast %1 : i32 to index
    %c0_16 = arith.constant 0 : index
    %c0_17 = arith.constant 0 : index
    %36 = vector.load %arg7[%35, %c0_16, %c0_17] : memref<1x1x8xf32, #tpu.memory_space<vmem>>, vector<1x1x8xf32>
    %37 = vector.shape_cast %36 : vector<1x1x8xf32> to vector<1x8xf32>
    %38 = vector.shape_cast %34 : vector<1x8xf32> to vector<1x1x8xf32>
    tpu.vector_store %arg7[%35, %c0_16, %c0_17], %38 {strides = array<i32>} : memref<1x1x8xf32, #tpu.memory_space<vmem>>, vector<1x1x8xf32>,
    %c1_i32_18 = arith.constant 1 : i32
    return
  }
  func.func @transform_0(%arg0: i32) -> (i32, i32) {
    %c0_i32 = arith.constant 0 : i32
    %c0_i32_0 = arith.constant 0 : i32
    %c0_i32_1 = arith.constant 0 : i32
    return %c0_i32, %c0_i32_0 : i32, i32
  }
  func.func @transform_1(%arg0: i32) -> (i32, i32) {
    %c0_i32 = arith.constant 0 : i32
    %c0_i32_0 = arith.constant 0 : i32
    %c0_i32_1 = arith.constant 0 : i32
    return %c0_i32, %c0_i32_0 : i32, i32
  }
  func.func @transform_2(%arg0: i32) -> (i32, i32) {
    %c0_i32 = arith.constant 0 : i32
    %c0_i32_0 = arith.constant 0 : i32
    %c0_i32_1 = arith.constant 0 : i32
    return %c0_i32, %c0_i32_0 : i32, i32
  }
  func.func @transform_3(%arg0: i32) -> (i32, i32, i32) {
    %c0_i32 = arith.constant 0 : i32
    %c0_i32_0 = arith.constant 0 : i32
    %c0_i32_1 = arith.constant 0 : i32
    return %arg0, %c0_i32, %c0_i32_0 : i32, i32, i32
  }
  func.func @transform_4(%arg0: i32) -> (i32, i32, i32) {
    %c0_i32 = arith.constant 0 : i32
    %c0_i32_0 = arith.constant 0 : i32
    %c0_i32_1 = arith.constant 0 : i32
    return %arg0, %c0_i32, %c0_i32_0 : i32, i32, i32
  }
  func.func @transform_5(%arg0: i32) -> (i32, i32, i32) {
    %c0_i32 = arith.constant 0 : i32
    %c0_i32_0 = arith.constant 0 : i32
    %c0_i32_1 = arith.constant 0 : i32
    return %arg0, %c0_i32, %c0_i32_0 : i32, i32, i32
  }
  func.func @transform_6(%arg0: i32) -> (i32, i32, i32) {
    %c0_i32 = arith.constant 0 : i32
    %c0_i32_0 = arith.constant 0 : i32
    %c0_i32_1 = arith.constant 0 : i32
    return %arg0, %c0_i32, %c0_i32_0 : i32, i32, i32
  }
}

</mosaic_0001>

<bundles_post_ra>
// kernel: tpu_custom_call.1
= control target key start
LH: loop header
LB: loop body
LE: loop exit
PB: predicated region body
PF: predicated region fallthrough
CT: control target
= control target key end

     0   :  { %11 = vsyncpa [#allocation3], 0  ;;  %s898_s0 = inlined_call_operand.vmem [shape: bf16[32,32], index: 0, kind: input, shape index: {}]   ;;  %s899_s1 = inlined_call_operand.vmem [shape: bf16[32,32], index: 1, kind: input, shape index: {}]   ;;  %s900_s2 = inlined_call_operand.vmem [shape: f32[32,1], index: 2, kind: input, shape index: {}]   ;;  %s901_s3 = inlined_call_operand.vmem [shape: f32[2,32,1], index: 3, kind: input, shape index: {}]   ;;  %s902_s4 = inlined_call_operand.vmem [shape: f32[2,32,8], index: 4, kind: input, shape index: {}]   ;;  %s903_s5 = inlined_call_operand.vmem [shape: f32[2,32,8], index: 5, kind: input, shape index: {}]   ;;  %s904_s6 = inlined_call_operand.hbm [shape: f32[2,1,8], index: 6, kind: output, shape index: {}]  }
   0x1   :  { %13 = vsyncpa [#allocation3 + $0x1], 0  ;;  %s771_s21 = smov 0   ;;  %s773_s22 = smov 0  }
   0x2   :  { %s775_s23 = smov 0   ;;  %s777_s24 = smov 0  }
   0x3 LB: > { %s792_s25 = sadd.s32 4294967295, %s733_s24   ;;  %s573_s26 = sadd.s32 4294967294, %s733_s24   ;;  %s733_s24 = sphi %s777_s24, %s910_s24   ;;  %s729_s23 = sphi %s775_s23, %s909_s23   ;;  %s725_s22 = sphi %s773_s22, %s908_s22   ;;  %s721_s21 = sphi %s771_s21, %s907_s21  }
   0x4   : > { %s796_s27 = sadd.s32 1, %s733_s24   ;;  %s167_s28 = sadd.s32 1, %s729_s23 }
   0x5   : > { %s164_s29 = ssub.s32 %s733_s24, %s796_s27  ;;  %p177_p0 = scmp.ne.s32.totalorder %s729_s23, %s725_s22 }
   0x6   : > { %p165_p1 = scmp.eq.s32.totalorder %s164_s29, 0  ;;  %p178_p2 = scmp.eq.s32.totalorder %s792_s25, 1 }
   0x7   : > { %p183_p3 = scmp.ne.s32.totalorder %s725_s22, %s721_s21  ;;  %p184_p4 = scmp.eq.s32.totalorder %s573_s26, 1 }
   0x8   : > { %s807_s30 = scalar_select %p165_p1, %s729_s23, %s167_s28  }
   0x9   : > { %p809_p5 = por %p178_p2, %p177_p0  ;;  %p813_p6 = por %p184_p4, %p183_p3 }
   0xa   : > { %p576_p7 = scmp.ge.s32.totalorder %s733_s24, 1  ;;  %p235_p8 = scmp.lt.s32.totalorder %s733_s24, 3 }
   0xc   : > { %p236_p9 = pnand %p576_p7, %p235_p8 }
   0xd   : > { %p274_p10 = scmp.lt.s32.totalorder (!%p236_p9), %s792_s25, 1  ;;  %s691_s17 = scalar_lea.hbm (!%p236_p9), %s904_s6, 2 }
   0xe   : > { %239 = sbr.rel (%p236_p9) target bundleno = 470 (0x1d6), region = 44 }
  0x13   : > { %v735_v0 = vmov 0   ;;  %s275_s9 = scalar_select %p274_p10, %s792_s25, 1  ;;  %v413_v1 = vld [vmem:[%s900_s2] sm:$0xff]  ;;  %v414_v15 = vld [vmem:[%s900_s2 + $0x8] sm:$0xff]  ;;  %vm320_vm0 = vcmask 261120   ;;  %v415_v23 = vld [vmem:[%s900_s2 + $0x10] sm:$0xff] }
  0x14   : > { %656 = vset.pattern.permute.xlu0 %v735_v0  ;;  %657 = vset.pattern.permute.xlu1 %v735_v0  ;;  %v610_v17 = vld [vmem:[%s899_s1] sm:$0xff]  ;;  %v611_v18 = vld [vmem:[%s899_s1 + $0x8] sm:$0xff]  ;;  %v416_v24 = vld [vmem:[%s900_s2 + $0x18] sm:$0xff]  ;;  %vm441_vm1 = vcmask 64512   ;;  %vm479_vm6 = vcmask 57344  }
  0x15   : > { %658 = vset.pattern.permute.xlu2 %v735_v0  ;;  %s605_s12 = sshll.u32 %s275_s9, 5  ;;  %v608_v19 = vld [vmem:[%s898_s0] sm:$0xff]  ;;  %v609_v20 = vld [vmem:[%s898_s0 + $0x8] sm:$0xff]  ;;  %s490_s9 = scalar_lea.hbm %s904_s6, %s792_s25 }
  0x16   : > { %419 = vperm.xlu2 %658, %v413_v1   ;;  %s288_s15 = scalar_lea.vmem %s903_s5, %s605_s12  ;;  %s283_s18 = scalar_lea.vmem %s902_s4, %s605_s12 }
  0x17   : > { %v298_v2 = vld [vmem:[%s288_s15 + $0x10] sm:$0xff]  ;;  %v299_v3 = vld [vmem:[%s288_s15 + $0x18] sm:$0xff]  ;;  %s833_s26 = scalar_lea.vmem %s901_s3, %s605_s12  ;;  %v296_v7 = vld [vmem:[%s288_s15] sm:$0xff]  ;;  %s494_s12 = sshll.u32 %s490_s9, 4  ;;  %s495_s12 = int_to_ptr.hbm [resolvable:$true] %s494_s12 }
  0x18   : > { %v292_v4 = vld [vmem:[%s283_s18 + $0x10] sm:$0xff]  ;;  %v301_v5 = vpack.c.bf16 %v299_v3, %v298_v2  ;;  %v293_v6 = vld [vmem:[%s283_s18 + $0x18] sm:$0xff]  ;;  %v297_v8 = vld [vmem:[%s288_s15 + $0x8] sm:$0xff]  ;;  %s685_s14 = sshra.s32 %s495_s12, 4  ;;  %s686_s14 = int_to_ptr.hbm [resolvable:$true] %s685_s14 }
  0x19   : > { %v295_v9 = vpack.c.bf16 %v293_v6, %v292_v4  ;;  %v290_v10 = vld [vmem:[%s283_s18] sm:$0xff]  ;;  %v291_v11 = vld [vmem:[%s283_s18 + $0x8] sm:$0xff]  ;;  %v300_v13 = vpack.c.bf16 %v297_v8, %v296_v7  ;;  %v383_v14 = vld [vmem:[%s833_s26 + $0x10] sm:$0xff]  ;;  %s687_s25 = scalar_lea.hbm %s686_s14, 1  ;;  %p692_p0 = scmp.lt.s32.totalorder %s686_s14, %s904_s6 }
  0x1a   : > { %v381_v12 = vld [vmem:[%s833_s26] sm:$0xff]  ;;  %333 = vmatpush.bf16.msra.mxu0 %v301_v5  ;;  %612 = vmatpush.bf16.msra.mxu2 %v301_v5  ;;  %v294_v16 = vpack.c.bf16 %v291_v11, %v290_v10  ;;  %v382_v21 = vld [vmem:[%s833_s26 + $0x8] sm:$0xff]  ;;  %v384_v22 = vld [vmem:[%s833_s26 + $0x18] sm:$0xff]  ;;  %s272_s26 = sand.u32 1, %s725_s22   ;;  %p688_p11 = scmp.ne.s32.totalorder %s686_s14, %s687_s25 }
  0x1b   : > { %368 = vmatpush.bf16.msra.mxu1 %v295_v9  ;;  %614 = vmatpush.bf16.msra.mxu3 %v295_v9  ;;  %s273_s10 = scalar_lea.vmem [#allocation2], %s272_s26  ;;  %s482_s13 = scalar_lea.sflag [#allocation3], %s272_s26 }
  0x1c   : > { %387 = vperm.xlu0 %656, %v381_v12   ;;  %397 = vperm.xlu1 %657, %v383_v14   ;;  %s492_s11 = sshll.u32 %s273_s10, 4  ;;  %p689_p12 = pnand %p688_p11, %p809_p5  ;;  %s493_s11 = int_to_ptr.vmem [resolvable:$true] %s492_s11 }
  0x1d   : > { %p693_p1 = scmp.lt.s32.totalorder %s691_s17, %s687_s25 }
  0x1e   : > { %424 = vperm.xlu2 %658, %v414_v15   ;;  %334 = vmatpush.bf16.msra.mxu0 %v300_v13  ;;  %p690_p13 = pneg %p689_p12 }
  0x1f   : > { %613 = vmatpush.bf16.msra.mxu2 %v300_v13  ;;  %369 = vmatpush.bf16.msra.mxu1 %v294_v16  ;;  %p694_p2 = por %p693_p1, %p692_p0 }
  0x20   : > { %615 = vmatpush.bf16.msra.mxu3 %v294_v16 }
  0x21   : > { %591 = vmatmul.msk.bf16.vlgmr.msra.gmra.mxu0 %vm320_vm0, %v610_v17  ;;  %p695_p3 = pnand %p694_p2, %p690_p13 }
  0x22   : > { %592 = vmatmul.msk.bf16.vlgmr.msra.gmra.mxu2 %vm320_vm0, %v611_v18  ;;  %601 = vmatmul.msk.bf16.vlgmr.msra.gmra.mxu1 %vm320_vm0, %v608_v19 }
  0x23   : > { %602 = vmatmul.msk.bf16.vlgmr.msra.gmra.mxu3 %vm320_vm0, %v609_v20 }
  0x24   : > { %392 = vperm.xlu0 %656, %v382_v21   ;;  %402 = vperm.xlu1 %657, %v384_v22  }
  0x2c   : > { %429 = vperm.xlu0 %656, %v415_v23   ;;  %434 = vperm.xlu1 %657, %v416_v24  }
  0x70   : > { %v420_v36 = vpop.permute.xlu2 %419 }
  0x78   : > { %v425_v50 = vpop.permute.xlu2 %424 }
  0x8e   : > { %v388_v26 = vpop.permute.xlu0 %387  ;;  %v398_v29 = vpop.permute.xlu1 %397 }
  0x96   : > { %v393_v39 = vpop.permute.xlu0 %392  ;;  %v403_v44 = vpop.permute.xlu1 %402 }
  0x9e   : > { %v336_v25 = vpop.f32.mrf.mxu0  ;;  %v430_v52 = vpop.permute.xlu0 %429 }
  0x9f   : > { %v371_v27 = vpop.f32.mrf.mxu1  ;;  %v435_v58 = vpop.permute.xlu1 %434 }
  0xa0   : > { %v372_v28 = vadd.f32 %v371_v27, %v336_v25 }
  0xa2   : > { %v405_v30 = vadd.f32 %v388_v26, %v372_v28 }
  0xa4   : > { %659 = vtanh.f32 %v405_v30 }
  0xa5   : > { %v341_v31 = vpop.f32.mrf.mxu2 }
  0xa6   : > { %v376_v32 = vpop.f32.mrf.mxu3  ;;  %v338_v34 = vpop.f32.mrf.mxu0 }
  0xa7   : > { %v377_v33 = vadd.f32 %v376_v32, %v341_v31  ;;  %v373_v35 = vpop.f32.mrf.mxu1 }
  0xa8   : > { %v374_v38 = vadd.f32 %v373_v35, %v338_v34 }
  0xa9   : > { %v407_v37 = vadd.f32 %v398_v29, %v377_v33 }
  0xaa   : > { %v406_v40 = vadd.f32 %v393_v39, %v374_v38  ;;  %v660_v43 = vpop.eup %659 }
  0xab   : > { %661 = vtanh.f32 %v407_v37  ;;  %v437_v48 = vmul.f32 %v660_v43, %v420_v36 }
  0xac   : > { %663 = vtanh.f32 %v406_v40 }
  0xad   : > { %v343_v41 = vpop.f32.mrf.mxu2  ;;  %v442_v53 = vsel %vm441_vm1, %v437_v48, 0.0 }
  0xae   : > { %v378_v42 = vpop.f32.mrf.mxu3 }
  0xaf   : > { %v379_v45 = vadd.f32 %v378_v42, %v343_v41 }
  0xb1   : > { %v408_v46 = vadd.f32 %v403_v44, %v379_v45  ;;  %v662_v47 = vpop.eup %661 }
  0xb2   : > { %v664_v49 = vpop.eup %663  ;;  %v439_v54 = vmul.f32 %v662_v47, %v430_v52 }
  0xb3   : > { %665 = vtanh.f32 %v408_v46  ;;  %v438_v51 = vmul.f32 %v664_v49, %v425_v50 }
  0xb4   : > { %v445_v59 = vsel %vm441_vm1, %v439_v54, 0.0 }
  0xb5   : > { %v443_v55 = vsel %vm441_vm1, %v438_v51, 0.0 }
  0xb6   : > { %v444_v56 = vadd.f32 %v443_v55, %v442_v53 }
  0xb8   : > { %v446_v61 = vadd.f32 %v445_v59, %v444_v56 }
  0xb9   : > { %v666_v57 = vpop.eup %665 }
  0xba   : > { %v440_v60 = vmul.f32 %v666_v57, %v435_v58 }
  0xbc   : > { %v447_v62 = vsel %vm441_vm1, %v440_v60, 0.0 }
  0xbd   : > { %v448_v63 = vadd.f32 %v447_v62, %v446_v61 }
  0xbf   : > { %v449_v0 = vrot.slane %v448_v63, 4 }
  0xc1   : > { %v450_v1 = vadd.f32 %v449_v0, %v448_v63 }
  0xc3   : > { %v451_v2 = vrot.slane %v450_v1, 2 }
  0xc5   : > { %v452_v3 = vadd.f32 %v451_v2, %v450_v1 }
  0xc7   : > { %v453_v4 = vrot.slane %v452_v3, 1 }
  0xc9   : > { %v454_v5 = vadd.f32 %v453_v4, %v452_v3 }
  0xcb   : > { %v455_v6 = vsel %vm441_vm1, %v454_v5, -inf }
  0xcc   : > { %456 = vmax.xlane.f32.xlu2 %v455_v6 }
 0x13f   : > { %v457_v7 = vpop.xlane.xlu2 %456 }
 0x140   : > { %v458_v8 = vsub.f32 %v454_v5, %v457_v7 }
 0x142   : > { %v459_v9 = vmul.f32 1.442695, %v458_v8 }
 0x144   : > { %667 = vpow2.f32 %v459_v9 }
 0x14a   : > { %v668_v10 = vpop.eup %667 }
 0x14b   : > { %v461_v11 = vsel %vm441_vm1, %v668_v10, 0.0 }
 0x14c   : > { %462 = vadd.xlane.f32.xlu0 %v461_v11 }
 0x1bf   : > { %v463_v12 = vpop.xlane.xlu0 %462 }
 0x1c0   : > { %669 = vrcp.f32 %v463_v12  ;;  %v475_v16 = vand.u32 2147483648, %v463_v12  ;;  %v473_v18 = vand.u32 2147483647, %v463_v12  ;;  %vm469_vm3 = vweird.f32 %v463_v12 }
 0x1c2   : > { %v476_v20 = vor.u32 1.1754944e-38, %v475_v16  ;;  %vm474_vm5 = vcmp.eq.f32.partialorder %v473_v18, 8.507059e+37 }
 0x1c6   : > { %v670_v13 = vpop.eup %669 }
 0x1c7   : > { %v465_v14 = vmul.f32 %v670_v13, %v463_v12  ;;  %vm470_vm2 = vweird.f32 %v670_v13 }
 0x1c8   : > { %vm471_vm4 = vmor %vm469_vm3, %vm470_vm2 }
 0x1c9   : > { %v466_v15 = vsub.f32 1.0, %v465_v14 }
 0x1cb   : > { %v467_v17 = vmul.f32 %v670_v13, %v466_v15 }
 0x1cd   : > { %v468_v19 = vadd.f32 %v670_v13, %v467_v17 }
 0x1cf   : > { %v472_v21 = vsel %vm471_vm4, %v670_v13, %v468_v19 }
 0x1d0   : > { %v477_v22 = vsel %vm474_vm5, %v476_v20, %v472_v21 }
 0x1d1   : > { %v478_v23 = vmul.f32 %v668_v10, %v477_v22 }
 0x1d3   : > { %480 = vst.msk [vmem:[%s273_s10] sm:$0x1] %vm479_vm6, %v478_v23 }
 0x1d4   : > { %698 = shalt.err (!%p695_p3)
}
 0x1d5   : > { %616 = dma.vmem_to_hbm [thread:$0]  (%p809_p5), %s493_s11, 16, %s495_s12, %s482_s13  }
 0x1d6 PF: > { %p622_p4 = scmp.ge.s32.totalorder %s733_s24, 2  ;;  %s506_s20 = sand.u32 1, %s721_s21  }
 0x1d7   : > { %s507_s26 = scalar_lea.sflag [#allocation3], %s506_s20 }
 0x1d8   : > { %p619_p7 = pnand %p622_p4, %p813_p6 }
 0x1da   : > { %p620_p8 = pneg %p619_p7 }
 0x1dc   : > { %716 = dma.done.wait (%p620_p8), %s507_s26, 16  }
 0x1dd   : > { %718 = vsyncadd (%p620_p8), %s507_s26, 4294967280  ;;  %p16_p9 = scmp.ge.s32.totalorder %s796_s27, 4   ;;  %s907_s21 = smov %s725_s22 }
 0x1de   : > { %s908_s22 = smov %s729_s23  ;;  %s909_s23 = smov %s807_s30 }
 0x1df   : > { %s910_s24 = smov %s796_s27  ;;  %18 = sbr.rel (!%p16_p9) target bundleno = 3 (0x3), region = 85 }
 0x1e4   :  { %512 = vsyncpa [#allocation3], 1 }
 0x1e5   :  { %514 = vsyncpa [#allocation3 + $0x1], 1 }

</bundles_post_ra>
